<compile_context>
chip_gen: v5e
topology: v5e:2x2
jax: 0.10.0
libtpu: 0.0.40
codegen_flags: <defaults>
</compile_context>

<pallas_src>
import math
import functools

import jax
import jax.numpy as jnp
from jax import lax
from jax.experimental import pallas as pl
from jax.experimental.pallas import tpu as pltpu


def _round_up(x: int, m: int) -> int:
    return ((x + m - 1) // m) * m


def _sublane_multiple(dtype) -> int:
    itemsize = jnp.dtype(dtype).itemsize
    return {4: 8, 2: 16, 1: 32}.get(itemsize, 8)


def _pick_tile(dim: int, target: int, mult: int):
    """Pick a tile size (multiple of `mult`, <= ~target) minimizing padding.

    Splits `dim` into ceil(dim/target) roughly equal tiles instead of always
    padding up to a fixed power-of-two tile, so awkward extents (e.g. 520)
    don't nearly double the streamed bytes.
    """
    target = max(mult, _round_up(target, mult))
    n_tiles = max(1, -(-dim // target))                  # ceil(dim / target)
    tile = _round_up(-(-dim // n_tiles), mult)           # even split, aligned
    tile = min(tile, _round_up(dim, mult))
    padded = _round_up(dim, tile)
    return tile, padded


def _linear_kernel(*refs, has_bias: bool, scale: bool, scale_before: bool,
                   inv_sqrt_dim: float, multi_k: bool):
    """One (M-tile, N-tile) output block; optional reduction over the K axis."""
    refs = list(refs)
    x_ref = refs.pop(0)
    w_ref = refs.pop(0)
    b_ref = refs.pop(0) if has_bias else None
    o_ref = refs.pop(0)
    acc_ref = refs.pop(0) if multi_k else None

    # x: (tm, tk), w: (tn, tk) — contract the shared K axis; weight kept in
    # its native (N, K) layout (no wrapper transpose).
    partial = lax.dot_general(
        x_ref[...], w_ref[...],
        dimension_numbers=(((1,), (1,)), ((), ())),
        preferred_element_type=jnp.float32)

    def _epilogue(acc_f32):
        out = acc_f32
        if scale and scale_before:
            # (x * s) @ W^T == s * (x @ W^T): scale folded into the epilogue.
            out = out * inv_sqrt_dim
        if has_bias:
            out = out + b_ref[...].astype(jnp.float32)
        if scale and not scale_before:
            out = out * inv_sqrt_dim
        return out.astype(o_ref.dtype)

    if not multi_k:
        # Whole K reduction in one shot: no scratch accumulator round-trip.
        o_ref[...] = _epilogue(partial)
        return

    k = pl.program_id(2)

    @pl.when(k == 0)
    def _():
        acc_ref[...] = partial              # first step writes (no zero-init)

    @pl.when(k > 0)
    def _():
        acc_ref[...] += partial

    @pl.when(k == pl.num_programs(2) - 1)
    def _():
        o_ref[...] = _epilogue(acc_ref[...])


def pallas_linear(x, weight, bias=None, *, scale=True, scale_before=False,
                  tm=None, tn=None, tk=None):
    """y = Linear(x) following the CPM module semantics.

    x:      (..., dim_in)  (canonically (batch, seq_len, dim_in))
    weight: (dim_out, dim_in)
    bias:   (dim_out,) or None
    returns (..., dim_out) in x.dtype
    """
    lead_shape = x.shape[:-1]
    dim_in = x.shape[-1]
    dim_out, wk = weight.shape
    assert wk == dim_in, (weight.shape, dim_in)

    M = 1
    for d in lead_shape:
        M *= int(d)
    K, N = dim_in, dim_out

    # ---- tile / padding selection -----------------------------------------
    sub = _sublane_multiple(x.dtype)                 # second-to-last dim rule
    tm, pM = _pick_tile(M, tm or 512, sub)           # M: sublane-aligned only
    tn, pN = _pick_tile(N, tn or 512, 128)           # N: lane-aligned
    tk, pK = _pick_tile(K, tk or 1024, 128)          # K: lane-aligned

    x2d = x.reshape(M, K)
    if (pM, pK) != (M, K):
        x2d = jnp.pad(x2d, ((0, pM - M), (0, pK - K)))
    w2d = weight
    if (pN, pK) != (N, K):
        w2d = jnp.pad(w2d, ((0, pN - N), (0, pK - K)))

    has_bias = bias is not None
    multi_k = (pK // tk) > 1

    args = [x2d, w2d]
    in_specs = [
        pl.BlockSpec((tm, tk), lambda i, j, k: (i, k)),   # x tile
        pl.BlockSpec((tn, tk), lambda i, j, k: (j, k)),   # weight tile (N, K)
    ]
    if has_bias:
        b2d = bias.reshape(1, N)
        if pN != N:
            b2d = jnp.pad(b2d, ((0, 0), (0, pN - N)))
        args.append(b2d)
        in_specs.append(pl.BlockSpec((1, tn), lambda i, j, k: (0, j)))

    kernel = functools.partial(
        _linear_kernel,
        has_bias=has_bias,
        scale=scale,
        scale_before=scale_before,
        inv_sqrt_dim=1.0 / math.sqrt(dim_in),
        multi_k=multi_k,
    )

    itemsize = jnp.dtype(x.dtype).itemsize
    # Double-buffered x/w/out tiles + (optional) bias + (optional) f32 acc.
    vmem_bytes = (2 * (tm * tk + tn * tk) * itemsize
                  + 2 * tm * tn * itemsize
                  + (2 * tn * itemsize if has_bias else 0)
                  + (tm * tn * 4 if multi_k else 0))
    # Safe on every chip: >= default scoped limit, <= v7x physical 64 MiB.
    vmem_limit = min(56 * 1024 * 1024,
                     max(32 * 1024 * 1024, int(1.5 * vmem_bytes)))

    cost = pl.CostEstimate(
        flops=2 * M * N * K,
        transcendentals=0,
        bytes_accessed=(M * K + N * K + (N if has_bias else 0) + M * N)
                       * itemsize,
    )

    scratch_shapes = [pltpu.VMEM((tm, tn), jnp.float32)] if multi_k else []

    out2d = pl.pallas_call(
        kernel,
        out_shape=jax.ShapeDtypeStruct((pM, pN), x.dtype),
        grid_spec=pltpu.PrefetchScalarGridSpec(
            num_scalar_prefetch=0,
            grid=(pM // tm, pN // tn, pK // tk),
            in_specs=in_specs,
            out_specs=pl.BlockSpec((tm, tn), lambda i, j, k: (i, j)),
            scratch_shapes=scratch_shapes,
        ),
        compiler_params=pltpu.CompilerParams(
            dimension_semantics=("parallel", "parallel", "arbitrary"),
            vmem_limit_bytes=vmem_limit),
        cost_estimate=cost,
    )(*args)

    if (pM, pN) != (M, N):
        out2d = out2d[:M, :N]
    return out2d.reshape(*lead_shape, N)


def _reference_linear(x, weight, bias, scale, scale_before):
    """Pure-JAX reference mirroring the PyTorch forward."""
    dim_in = x.shape[-1]
    xf = x.astype(jnp.float32)
    wf = weight.astype(jnp.float32)
    if scale and scale_before:
        xf = xf / math.sqrt(dim_in)
    y = xf @ wf.T
    if bias is not None:
        y = y + bias.astype(jnp.float32)
    if scale and not scale_before:
        y = y / math.sqrt(dim_in)
    return y.astype(x.dtype)


if __name__ == "__main__":
    batch, seq_len = 2, 8
    dim_in, dim_out = 32, 64
    init_mean, init_std = 0.0, 1.0
    dtype = jnp.bfloat16  # torch.half analogue on TPU

    key = jax.random.PRNGKey(0)
    kx, kw, kb = jax.random.split(key, 3)

    x = jax.random.normal(kx, (batch, seq_len, dim_in),
                          dtype=jnp.float32).astype(dtype)
    weight = (init_mean + init_std *
              jax.random.normal(kw, (dim_out, dim_in),
                                dtype=jnp.float32)).astype(dtype)
    bias = (init_mean + init_std *
            jax.random.normal(kb, (dim_out,), dtype=jnp.float32)).astype(dtype)

    # Config A: bias, scale after the matmul.
    y = jax.block_until_ready(
        pallas_linear(x, weight, bias, scale=True, scale_before=False))
    y_ref = _reference_linear(x, weight, bias, True, False)
    assert y.shape == (batch, seq_len, dim_out), y.shape
    assert y.dtype == dtype, y.dtype
    err = jnp.max(jnp.abs(y.astype(jnp.float32) - y_ref.astype(jnp.float32)))
    assert float(err) < 5e-2, f"config A max_err={float(err)}"

    # Config B: no bias, scale before the matmul (module defaults).
    y2 = jax.block_until_ready(
        pallas_linear(x, weight, None, scale=True, scale_before=True))
    y2_ref = _reference_linear(x, weight, None, True, True)
    err2 = jnp.max(jnp.abs(y2.astype(jnp.float32) - y2_ref.astype(jnp.float32)))
    assert float(err2) < 5e-2, f"config B max_err={float(err2)}"

    print("KERNEL_OK")
</pallas_src>

<mosaic_0001>
module attributes {stable_mosaic.version = 11 : i64} {
  func.func @_linear_kernel(%arg0: i32, %arg1: i32, %arg2: i32, %arg3: memref<16x128xbf16, #tpu.memory_space<vmem>>, %arg4: memref<128x128xbf16, #tpu.memory_space<vmem>>, %arg5: memref<1x128xbf16, #tpu.memory_space<vmem>>, %arg6: memref<16x128xbf16, #tpu.memory_space<vmem>>) attributes {dimension_semantics = [#tpu.dimension_semantics<parallel>, #tpu.dimension_semantics<parallel>, #tpu.dimension_semantics<arbitrary>], iteration_bounds = array<i64: 1, 1, 1>, scalar_prefetch = 0 : i64, scratch_operands = 0 : i64, tpu.core_type = #tpu.core_type<tc>, window_params = [{transform_indices = @transform_0, window_bounds = array<i64: 16, 128>}, {transform_indices = @transform_1, window_bounds = array<i64: 128, 128>}, {transform_indices = @transform_2, window_bounds = array<i64: 1, 128>}, {transform_indices = @transform_3, window_bounds = array<i64: 16, 128>}]} {
    %c0 = arith.constant 0 : index
    %c0_0 = arith.constant 0 : index
    %0 = vector.load %arg3[%c0, %c0_0] : memref<16x128xbf16, #tpu.memory_space<vmem>>, vector<16x128xbf16>
    %c0_1 = arith.constant 0 : index
    %c0_2 = arith.constant 0 : index
    %1 = vector.load %arg4[%c0_1, %c0_2] : memref<128x128xbf16, #tpu.memory_space<vmem>>, vector<128x128xbf16>
    %cst = arith.constant dense<0.000000e+00> : vector<16x128xf32>
    %2 = tpu.matmul %0, %1, %cst {dimension_numbers = #tpu.dot_dimension_numbers<[1], [1], [0], [0], [0, 0, 1, 0], [], []>} : vector<16x128xbf16>, vector<128x128xbf16>, vector<16x128xf32> -> vector<16x128xf32>
    %c0_3 = arith.constant 0 : index
    %c0_4 = arith.constant 0 : index
    %3 = vector.load %arg5[%c0_3, %c0_4] : memref<1x128xbf16, #tpu.memory_space<vmem>>, vector<1x128xbf16>
    %4 = arith.extf %3 : vector<1x128xbf16> to vector<1x128xf32>
    %5 = vector.broadcast %4 : vector<1x128xf32> to vector<16x128xf32>
    %6 = arith.addf %2, %5 : vector<16x128xf32>
    %cst_5 = arith.constant 0.176776692 : f32
    %7 = vector.broadcast %cst_5 : f32 to vector<16x128xf32>
    %8 = arith.mulf %6, %7 : vector<16x128xf32>
    %9 = arith.truncf %8 : vector<16x128xf32> to vector<16x128xbf16>
    %c0_6 = arith.constant 0 : index
    %c0_7 = arith.constant 0 : index
    %10 = vector.load %arg6[%c0_6, %c0_7] : memref<16x128xbf16, #tpu.memory_space<vmem>>, vector<16x128xbf16>
    tpu.vector_store %arg6[%c0_6, %c0_7], %9 {strides = array<i32>} : memref<16x128xbf16, #tpu.memory_space<vmem>>, vector<16x128xbf16>,
    return
  }
  func.func @transform_0(%arg0: i32, %arg1: i32, %arg2: i32) -> (i32, i32) {
    %c0_i32 = arith.constant 0 : i32
    return %arg0, %arg2 : i32, i32
  }
  func.func @transform_1(%arg0: i32, %arg1: i32, %arg2: i32) -> (i32, i32) {
    %c0_i32 = arith.constant 0 : i32
    return %arg1, %arg2 : i32, i32
  }
  func.func @transform_2(%arg0: i32, %arg1: i32, %arg2: i32) -> (i32, i32) {
    %c0_i32 = arith.constant 0 : i32
    %c0_i32_0 = arith.constant 0 : i32
    return %c0_i32, %arg1 : i32, i32
  }
  func.func @transform_3(%arg0: i32, %arg1: i32, %arg2: i32) -> (i32, i32) {
    %c0_i32 = arith.constant 0 : i32
    return %arg0, %arg1 : i32, i32
  }
}

</mosaic_0001>

<bundles_post_ra>
// kernel: tpu_custom_call.1
= control target key start
LH: loop header
LB: loop body
LE: loop exit
PB: predicated region body
PF: predicated region fallthrough
CT: control target
= control target key end

     0   :  { %8 = vsyncpa [#allocation3], 0  ;;  %s341_s0 = inlined_call_operand.hbm [shape: bf16[16,128], index: 0, kind: input, shape index: {}]   ;;  %s342_s1 = inlined_call_operand.hbm [shape: bf16[128,128], index: 1, kind: input, shape index: {}]   ;;  %s343_s2 = inlined_call_operand.vmem [shape: bf16[1,128], index: 2, kind: input, shape index: {}]   ;;  %s344_s3 = inlined_call_operand.hbm [shape: bf16[16,128], index: 3, kind: output, shape index: {}]  }
   0x1   :  { %9 = vsyncpa [#allocation6], 0 }
   0x2   :  { %10 = vsyncpa [#allocation4], 0  ;;  %s15_s14 = sshll.u32 %s341_s0, 4  ;;  %s295_s15 = smov [#allocation2]   ;;  %s16_s14 = int_to_ptr.hbm [resolvable:$true] %s15_s14 }
   0x3   :  { %s17_s16 = sshll.u32 %s295_s15, 4  ;;  %s28_s19 = sshll.u32 %s342_s1, 4  ;;  %s18_s16 = int_to_ptr.vmem [resolvable:$true] %s17_s16  ;;  %s29_s19 = int_to_ptr.hbm [resolvable:$true] %s28_s19 }
   0x4   :  { %s296_s20 = smov 64   ;;  %s297_s21 = smov 4  }
   0x5   :  { %23 = dma.hbm_to_vmem [thread:$0]  %s16_s14, 128, %s18_s16, [#allocation3], %s296_s20, %s296_s20, %s297_s21  }
   0x6   :  { %s298_s22 = smov [#allocation5]  }
   0x7   :  { %s30_s23 = sshll.u32 %s298_s22, 4  ;;  %s31_s23 = int_to_ptr.vmem [resolvable:$true] %s30_s23 }
   0x8   :  { %36 = dma.hbm_to_vmem [thread:$0]  %s29_s19, 1024, %s31_s23, [#allocation6], %s296_s20, %s296_s20, %s297_s21  }
   0x9   :  { %289 = dma.done.wait [#allocation3], 128  }
   0xa   :  { %290 = vsyncadd [#allocation3], 4294967168 }
   0xb   :  { %291 = dma.done.wait [#allocation6], 1024  }
   0xc   :  { %292 = vsyncadd [#allocation6], 4294966272  ;;  %v206_v0 = vld [vmem:[#allocation5 + $0x38] sm:$0xff]  ;;  %v205_v1 = vld [vmem:[#allocation5 + $0x30] sm:$0xff]  ;;  %s299_s24 = smov [#allocation7]   ;;  %s148_s28 = sshll.u32 %s344_s3, 4  ;;  %s149_s28 = int_to_ptr.hbm [resolvable:$true] %s148_s28 }
   0xd   :  { %122 = vmatpush.bf16.xpose.msra.mxu0 %v206_v0  ;;  %v204_v2 = vld [vmem:[#allocation5 + $0x28] sm:$0xff]  ;;  %v203_v3 = vld [vmem:[#allocation5 + $0x20] sm:$0xff]  ;;  %v202_v4 = vld [vmem:[#allocation5 + $0x18] sm:$0xff]  ;;  %s146_s25 = sshll.u32 %s299_s24, 4  ;;  %s147_s25 = int_to_ptr.vmem [resolvable:$true] %s146_s25 }
   0xe   :  { %v201_v5 = vld [vmem:[#allocation5 + $0x10] sm:$0xff]  ;;  %v200_v6 = vld [vmem:[#allocation5 + $0x8] sm:$0xff]  ;;  %v199_v7 = vld [vmem:[#allocation5] sm:$0xff] }
   0xf   :  { %v198_v8 = vld [vmem:[#allocation2] sm:$0xff] }
  0x10   :  { %v65_v9 = vld [vmem:[%s343_s2] sm:$0x1] }
  0x11   :  { %v66_v10 = vunpack.c.l.bf16 %v65_v9 }
  0x13   :  { %v67_v12 = vperm.slane %v66_v10, 0 }
  0x15   :  { %123 = vmatpush.bf16.xpose.msra.mxu0 %v205_v1 }
  0x1d   :  { %124 = vmatpush.bf16.xpose.msra.mxu0 %v204_v2 }
  0x25   :  { %125 = vmatpush.bf16.xpose.msra.mxu0 %v203_v3 }
  0x2d   :  { %126 = vmatpush.bf16.xpose.msra.mxu0 %v202_v4 }
  0x35   :  { %127 = vmatpush.bf16.xpose.msra.mxu0 %v201_v5 }
  0x3d   :  { %128 = vmatpush.bf16.xpose.msra.mxu0 %v200_v6 }
  0x45   :  { %129 = vmatpush.bf16.xpose.msra.mxu0 %v199_v7 }
  0x4c   :  { %130 = vmatmul.bf16.vlgmr.msra.gmra.mxu0 %v198_v8 }
  0xc9   :  { %v131_v11 = vpop.f32.mrf.mxu0 }
  0xca   :  { %v132_v13 = vadd.f32 %v131_v11, %v67_v12 }
  0xcc   :  { %v136_v16 = vmul.f32 0.17677669, %v132_v13 }
  0xd1   :  { %v133_v14 = vpop.f32.mrf.mxu0 }
  0xd2   :  { %v134_v15 = vadd.f32 %v133_v14, %v67_v12 }
  0xd4   :  { %v137_v17 = vmul.f32 0.17677669, %v134_v15 }
  0xd6   :  { %v210_v18 = vpack.c.bf16 %v137_v17, %v136_v16 }
  0xd8   :  { %211 = vst [vmem:[#allocation7] sm:$0xff] %v210_v18  }
  0xd9   :  { %154 = dma.vmem_to_hbm [thread:$0]  %s147_s25, 128, %s149_s28, [#allocation4], %s296_s20, %s296_s20, %s297_s21  }
  0xda   :  { %293 = dma.done.wait [#allocation4], 128  }
  0xdb   :  { %294 = vsyncadd [#allocation4], 4294967168 }
  0xdc   :  { %159 = vsyncpa [#allocation3], 1 }
  0xdd   :  { %160 = vsyncpa [#allocation6], 1 }
  0xde   :  { %161 = vsyncpa [#allocation4], 1 }

</bundles_post_ra>
